<compile_context>
chip_gen: v6e
topology: v6e:2x2x1
jax: 0.10.0
libtpu: 0.0.40
codegen_flags: <defaults>
</compile_context>

<pallas_src>
import functools

import jax
import jax.numpy as jnp
import numpy as np
from jax.experimental import pallas as pl
from jax.experimental.pallas import tpu as pltpu


def _round_up(n, m):
    return ((n + m - 1) // m) * m


def _encoding_kernel(scale_ref, kind_ref, x_ref, o_ref, *, n_rep):
    """Lane-dense NeRF positional encoding.

    scale_ref: (1, out_C) f32  per-column frequency (0 in the identity block)
    kind_ref : (1, out_C) i32  0 = identity column, 1 = sin column, 2 = cos column
    x_ref    : (tb, C)         input tile
    o_ref    : (tb, out_C)     output tile
    """
    xf = x_ref[...].astype(jnp.float32)            # compute in f32 even for bf16 inputs
    x_tiled = jnp.tile(xf, (1, n_rep))             # (tb, out_C): column j holds x[:, j % C]
    scale = scale_ref[...]                         # (1, out_C)
    kind = kind_ref[...]                           # (1, out_C)

    y = x_tiled * scale                            # exact per-column f*x (broadcast over rows)
    s = jnp.sin(y)                                 # lane-dense EUP work
    c = jnp.cos(y)
    out = jnp.where(kind == 0, x_tiled,            # exact passthrough for identity columns
                    jnp.where(kind == 1, s, c))
    o_ref[...] = out.astype(o_ref.dtype)


def encoding_style1(x, N_freqs=16, logscale=True, block_b=1024, out_dtype=None):
    """JAX/Pallas equivalent of EncodingStyle1.forward."""
    B, C = x.shape
    out_dtype = np.dtype(x.dtype) if out_dtype is None else np.dtype(out_dtype)
    n_rep = 2 * N_freqs + 1
    out_C = C * n_rep

    # Deterministic "parameter" init, mirroring the module's __init__.
    if logscale:
        freqs = 2.0 ** np.arange(N_freqs, dtype=np.float64)
    else:
        freqs = np.linspace(1.0, 2.0 ** (N_freqs - 1), N_freqs)

    # Per-output-column frequency and kind rows (built once, passed as VMEM inputs).
    scale = np.zeros((1, out_C), dtype=np.float32)
    kind = np.zeros((1, out_C), dtype=np.int32)
    for k, f in enumerate(freqs):
        s_lo = (1 + 2 * k) * C
        c_lo = (2 + 2 * k) * C
        scale[0, s_lo:s_lo + C] = np.float32(f)
        scale[0, c_lo:c_lo + C] = np.float32(f)
        kind[0, s_lo:s_lo + C] = 1
        kind[0, c_lo:c_lo + C] = 2

    # Batch tiling: large tiles, multiple of 8 sublanes; pad the tail instead of asserting.
    block_b = int(max(8, min(int(block_b), _round_up(B, 8))))
    block_b = _round_up(block_b, 8)
    Bp = _round_up(B, block_b)
    xp = x if Bp == B else jnp.pad(x, ((0, Bp - B), (0, 0)))

    kernel = functools.partial(_encoding_kernel, n_rep=n_rep)
    cost = pl.CostEstimate(
        flops=int(3 * Bp * out_C),
        transcendentals=int(2 * Bp * out_C),
        bytes_accessed=int(Bp * C * np.dtype(x.dtype).itemsize
                           + Bp * out_C * out_dtype.itemsize
                           + 2 * out_C * 4),
    )

    out = pl.pallas_call(
        kernel,
        out_shape=jax.ShapeDtypeStruct((Bp, out_C), out_dtype),
        grid=(Bp // block_b,),
        in_specs=[
            pl.BlockSpec((1, out_C), lambda i: (0, 0)),        # scale row (VMEM-resident)
            pl.BlockSpec((1, out_C), lambda i: (0, 0)),        # kind row  (VMEM-resident)
            pl.BlockSpec((block_b, C), lambda i: (i, 0)),      # x tile
        ],
        out_specs=pl.BlockSpec((block_b, out_C), lambda i: (i, 0)),
        compiler_params=pltpu.CompilerParams(
            dimension_semantics=("parallel",),                 # megacore-shardable batch axis
            vmem_limit_bytes=64 << 20,
        ),
        cost_estimate=cost,
    )(jnp.asarray(scale), jnp.asarray(kind), xp)

    return out if Bp == B else out[:B]


def _reference(x, N_freqs=16, logscale=True):
    if logscale:
        freqs = [2.0 ** k for k in range(N_freqs)]
    else:
        freqs = list(np.linspace(1.0, 2.0 ** (N_freqs - 1), N_freqs))
    out = [x]
    for f in freqs:
        out.append(jnp.sin(f * x))
        out.append(jnp.cos(f * x))
    return jnp.concatenate(out, axis=-1)


if __name__ == "__main__":
    key = jax.random.PRNGKey(0)
    N_FREQS = 16

    # Small shape consistent with the module's (B, in_channels) input.
    B, C = 8, 4
    x = jax.random.normal(key, (B, C), dtype=jnp.float32)
    out = encoding_style1(x, N_freqs=N_FREQS, logscale=True)
    out = jax.block_until_ready(out)
    ref = _reference(x, N_freqs=N_FREQS, logscale=True)
    assert out.shape == (B, C * (2 * N_FREQS + 1)), out.shape
    np.testing.assert_allclose(np.asarray(out), np.asarray(ref), rtol=1e-5, atol=1e-5)

    # Exercise the non-divisible batch (padded tail) and multi-tile grid path.
    B2 = 300
    x2 = jax.random.normal(jax.random.PRNGKey(1), (B2, C), dtype=jnp.float32)
    out2 = jax.block_until_ready(encoding_style1(x2, N_freqs=N_FREQS, logscale=True, block_b=128))
    ref2 = _reference(x2, N_freqs=N_FREQS, logscale=True)
    assert out2.shape == (B2, C * (2 * N_FREQS + 1)), out2.shape
    np.testing.assert_allclose(np.asarray(out2), np.asarray(ref2), rtol=1e-5, atol=1e-5)

    print("KERNEL_OK")
</pallas_src>

<mosaic_0001>
module attributes {stable_mosaic.version = 11 : i64} {
  func.func @_encoding_kernel(%arg0: i32, %arg1: memref<1x132xf32, #tpu.memory_space<vmem>>, %arg2: memref<1x132xi32, #tpu.memory_space<vmem>>, %arg3: memref<8x4xf32, #tpu.memory_space<vmem>>, %arg4: memref<8x132xf32, #tpu.memory_space<vmem>>) attributes {dimension_semantics = [#tpu.dimension_semantics<parallel>], iteration_bounds = array<i64: 1>, scalar_prefetch = 0 : i64, scratch_operands = 0 : i64, tpu.core_type = #tpu.core_type<tc>, window_params = [{pipeline_mode = #tpu.pipeline_mode<synchronous>, transform_indices = @transform_0, window_bounds = array<i64: 1, 132>}, {pipeline_mode = #tpu.pipeline_mode<synchronous>, transform_indices = @transform_1, window_bounds = array<i64: 1, 132>}, {transform_indices = @transform_2, window_bounds = array<i64: 8, 4>}, {transform_indices = @transform_3, window_bounds = array<i64: 8, 132>}]} {
    %c0 = arith.constant 0 : index
    %c0_0 = arith.constant 0 : index
    %0 = vector.load %arg3[%c0, %c0_0] : memref<8x4xf32, #tpu.memory_space<vmem>>, vector<8x4xf32>
    %1 = tpu.concatenate %0, %0, %0, %0, %0, %0, %0, %0, %0, %0, %0, %0, %0, %0, %0, %0, %0, %0, %0, %0, %0, %0, %0, %0, %0, %0, %0, %0, %0, %0, %0, %0, %0 in 1 : vector<8x4xf32>, vector<8x4xf32>, vector<8x4xf32>, vector<8x4xf32>, vector<8x4xf32>, vector<8x4xf32>, vector<8x4xf32>, vector<8x4xf32>, vector<8x4xf32>, vector<8x4xf32>, vector<8x4xf32>, vector<8x4xf32>, vector<8x4xf32>, vector<8x4xf32>, vector<8x4xf32>, vector<8x4xf32>, vector<8x4xf32>, vector<8x4xf32>, vector<8x4xf32>, vector<8x4xf32>, vector<8x4xf32>, vector<8x4xf32>, vector<8x4xf32>, vector<8x4xf32>, vector<8x4xf32>, vector<8x4xf32>, vector<8x4xf32>, vector<8x4xf32>, vector<8x4xf32>, vector<8x4xf32>, vector<8x4xf32>, vector<8x4xf32>, vector<8x4xf32> -> vector<8x132xf32>
    %c0_1 = arith.constant 0 : index
    %c0_2 = arith.constant 0 : index
    %2 = vector.load %arg1[%c0_1, %c0_2] : memref<1x132xf32, #tpu.memory_space<vmem>>, vector<1x132xf32>
    %c0_3 = arith.constant 0 : index
    %c0_4 = arith.constant 0 : index
    %3 = vector.load %arg2[%c0_3, %c0_4] : memref<1x132xi32, #tpu.memory_space<vmem>>, vector<1x132xi32>
    %4 = vector.broadcast %2 : vector<1x132xf32> to vector<8x132xf32>
    %5 = arith.mulf %1, %4 : vector<8x132xf32>
    %6 = math.sin %5 : vector<8x132xf32>
    %7 = math.cos %5 : vector<8x132xf32>
    %c0_i32 = arith.constant 0 : i32
    %8 = vector.broadcast %c0_i32 : i32 to vector<1x132xi32>
    %9 = arith.cmpi eq, %3, %8 : vector<1x132xi32>
    %c1_i32 = arith.constant 1 : i32
    %10 = vector.broadcast %c1_i32 : i32 to vector<1x132xi32>
    %11 = arith.cmpi eq, %3, %10 : vector<1x132xi32>
    %12 = vector.shape_cast %11 : vector<1x132xi1> to vector<1x132xi1>
    %13 = vector.broadcast %12 : vector<1x132xi1> to vector<8x132xi1>
    %14 = arith.select %13, %6, %7 : vector<8x132xi1>, vector<8x132xf32>
    %15 = vector.shape_cast %9 : vector<1x132xi1> to vector<1x132xi1>
    %16 = vector.broadcast %15 : vector<1x132xi1> to vector<8x132xi1>
    %17 = arith.select %16, %1, %14 : vector<8x132xi1>, vector<8x132xf32>
    %c0_5 = arith.constant 0 : index
    %c0_6 = arith.constant 0 : index
    %18 = vector.load %arg4[%c0_5, %c0_6] : memref<8x132xf32, #tpu.memory_space<vmem>>, vector<8x132xf32>
    tpu.vector_store %arg4[%c0_5, %c0_6], %17 {strides = array<i32>} : memref<8x132xf32, #tpu.memory_space<vmem>>, vector<8x132xf32>,
    return
  }
  func.func @transform_0(%arg0: i32) -> (i32, i32) {
    %c0_i32 = arith.constant 0 : i32
    %c0_i32_0 = arith.constant 0 : i32
    %c0_i32_1 = arith.constant 0 : i32
    return %c0_i32, %c0_i32_0 : i32, i32
  }
  func.func @transform_1(%arg0: i32) -> (i32, i32) {
    %c0_i32 = arith.constant 0 : i32
    %c0_i32_0 = arith.constant 0 : i32
    %c0_i32_1 = arith.constant 0 : i32
    return %c0_i32, %c0_i32_0 : i32, i32
  }
  func.func @transform_2(%arg0: i32) -> (i32, i32) {
    %c0_i32 = arith.constant 0 : i32
    %c0_i32_0 = arith.constant 0 : i32
    return %arg0, %c0_i32 : i32, i32
  }
  func.func @transform_3(%arg0: i32) -> (i32, i32) {
    %c0_i32 = arith.constant 0 : i32
    %c0_i32_0 = arith.constant 0 : i32
    return %arg0, %c0_i32 : i32, i32
  }
}

</mosaic_0001>

<bundles_post_ra>
// kernel: tpu_custom_call.1
= control target key start
LH: loop header
LB: loop body
LE: loop exit
PB: predicated region body
PF: predicated region fallthrough
CT: control target
= control target key end

     0   :  { %s738_s14 = smov 4   ;;  %s739_s15 = smov 12   ;;  %s968_s0 = inlined_call_operand.vmem [shape: f32[1,132], index: 0, kind: input, shape index: {}]   ;;  %s969_s1 = inlined_call_operand.vmem [shape: s32[1,132], index: 1, kind: input, shape index: {}]   ;;  %s970_s2 = inlined_call_operand.vmem [shape: f32[8,4], index: 2, kind: input, shape index: {}]   ;;  %s971_s3 = inlined_call_operand.hbm [shape: f32[8,132], index: 3, kind: output, shape index: {}]  }
   0x1   :  { %v800_v0 = vld [vmem:[%s970_s2] sm:$0xff] }
   0x2   :  { %17 = vrot.lane.b32.xlu0 %v800_v0, %s738_s14  ;;  %23 = vrot.lane.b32.xlu1 %v800_v0, %s739_s15 }
   0x3   :  { %8 = vsyncpa [#allocation3], 0  ;;  %s740_s16 = smov 8   ;;  %s741_s17 = smov 16   ;;  %v175_v1 = vlaneseq  ;;  %v831_v3 = vld [vmem:[%s968_s0] sm:$0x3] }
   0x4   :  { %s742_s18 = smov 20   ;;  %s743_s19 = smov 24   ;;  %v769_v15 = vmov 2102212464   ;;  %v770_v17 = vmov 920167782  }
   0x5   :  { %s744_s2 = smov 28   ;;  %s745_s20 = smov 32   ;;  %v824_v2 = vshrl.u32 %v175_v1, 7  ;;  %v771_v21 = vmov 1326507024   ;;  %vm110_vm7 = vcmask 31744  }
   0x6   :  { %20 = vrot.lane.b32.xlu0 %v800_v0, %s740_s16  ;;  %26 = vrot.lane.b32.xlu1 %v800_v0, %s741_s17  ;;  %s746_s21 = smov 36   ;;  %s747_s22 = smov 40   ;;  %v772_v25 = vmov 683565275   ;;  %v773_v27 = vmov 2475754826  }
   0x7   :  { %s748_s23 = smov 44   ;;  %s749_s24 = smov 48   ;;  %v834_v4 = vsub.s32 1, %v824_v2  ;;  %v774_v32 = vmov 2131351028   ;;  %vm112_vm8 = vcmask 64512  }
   0x8   :  { %s750_s25 = smov 52   ;;  %s751_s26 = smov 56   ;;  %vm114_vm10 = vcmask 97280   ;;  %vm116_vm12 = vcmask 130048   ;;  %vm118_vm13 = vcmask 162816   ;;  %vm120_vm14 = vcmask 195584  }
   0x9   :  { %s752_s27 = smov 60   ;;  %s753_s28 = smov 64   ;;  %v182_v5 = vrot.slane %v831_v3, %v834_v4  ;;  %vm122_vm15 = vcmask 228352  }
   0xa   :  { %29 = vrot.lane.b32.xlu0 %v800_v0, %s742_s18  ;;  %32 = vrot.lane.b32.xlu1 %v800_v0, %s743_s19  ;;  %s754_s29 = smov 68   ;;  %s755_s30 = smov 72  }
   0xb   :  { %s756_s4 = smov 76   ;;  %s757_s5 = smov 80   ;;  %v841_v6 = vmul.f32 %v182_v5, %v800_v0 }
   0xc   :  { %s758_s6 = smov 84   ;;  %s759_s7 = smov 88  }
   0xd   :  { %s760_s8 = smov 92   ;;  %s761_s9 = smov 96   ;;  %v294_v7 = vand.u32 2139095040, %v841_v6  ;;  %v291_v14 = vand.u32 2147483647, %v841_v6  ;;  %vm293_vm9 = vcmp.lt.s32.totalorder %v841_v6, 0 }
   0xe   :  { %35 = vrot.lane.b32.xlu0 %v800_v0, %s744_s2  ;;  %38 = vrot.lane.b32.xlu1 %v800_v0, %s745_s20  ;;  %s762_s12 = smov 100   ;;  %s763_s13 = smov 104  }
   0xf   :  { %s764_s14 = smov 108   ;;  %s765_s0 = smov 112   ;;  %v295_v8 = vshrl.u32 %v294_v7, 23  ;;  %v298_v23 = vand.u32 8388607, %v291_v14 }
  0x10   :  { %s766_s15 = smov 116   ;;  %s767_s16 = smov 120   ;;  %vm879_vm11 = vcmp.le.f32.partialorder %v291_v14, 0.7853982 }
  0x11   :  { %v649_v9 = vadd.s32 4294967169, %v295_v8  ;;  %s768_s17 = smov 124   ;;  %v299_v31 = vor.u32 8388608, %v298_v23 }
  0x12   :  { %41 = vrot.lane.b32.xlu0 %v800_v0, %s746_s21  ;;  %44 = vrot.lane.b32.xlu1 %v800_v0, %s747_s22 }
  0x13   :  { %v301_v10 = vadd.s32 1, %v649_v9  ;;  %v339_v41 = vshll.u32 %v299_v31, 8 }
  0x15   :  { %vm302_vm0 = vcmp.gt.s32.totalorder %v301_v10, 0 }
  0x16   :  { %47 = vrot.lane.b32.xlu0 %v800_v0, %s748_s23  ;;  %50 = vrot.lane.b32.xlu1 %v800_v0, %s749_s24  ;;  %v303_v11 = vsel %vm302_vm0, %v301_v10, 0  ;;  %vm124_vm0 = vcmask 261120  }
  0x17   :  { %v305_v12 = vand.u32 31, %v303_v11  ;;  %v304_v19 = vshrl.u32 %v303_v11, 5 }
  0x19   :  { %v306_v13 = vsub.s32 32, %v305_v12  ;;  %v317_v16 = vshll.u32 %v769_v15, %v305_v12  ;;  %v320_v20 = vshll.u32 %v770_v17, %v305_v12  ;;  %v308_v26 = vshll.u32 %v772_v25, %v305_v12 }
  0x1a   :  { %53 = vrot.lane.b32.xlu0 %v800_v0, %s750_s25  ;;  %56 = vrot.lane.b32.xlu1 %v800_v0, %s751_s26  ;;  %v311_v29 = vshll.u32 %v773_v27, %v305_v12  ;;  %vm326_vm1 = vcmp.lt.s32.totalorder %v304_v19, 4  ;;  %v314_v35 = vshll.u32 %v774_v32, %v305_v12  ;;  %vm323_vm2 = vcmp.lt.s32.totalorder %v304_v19, 1 }
  0x1b   :  { %v318_v18 = vshrl.u32 %v770_v17, %v306_v13  ;;  %v321_v22 = vshrl.u32 %v771_v21, %v306_v13  ;;  %v309_v28 = vshrl.u32 %v773_v27, %v306_v13  ;;  %v312_v33 = vshrl.u32 %v774_v32, %v306_v13 }
  0x1c   :  { %v315_v36 = vshrl.u32 %v769_v15, %v306_v13  ;;  %vm324_vm3 = vcmp.lt.s32.totalorder %v304_v19, 2  ;;  %vm325_vm4 = vcmp.lt.s32.totalorder %v304_v19, 3  ;;  %v307_v44 = vshrl.u32 %v772_v25, %v306_v13 }
  0x1d   :  { %v319_v24 = vor.u32 %v318_v18, %v317_v16  ;;  %v322_v30 = vor.u32 %v321_v22, %v320_v20  ;;  %v310_v34 = vor.u32 %v309_v28, %v308_v26  ;;  %v313_v39 = vor.u32 %v312_v33, %v311_v29 }
  0x1e   :  { %59 = vrot.lane.b32.xlu0 %v800_v0, %s752_s27  ;;  %62 = vrot.lane.b32.xlu1 %v800_v0, %s753_s28  ;;  %v316_v40 = vor.u32 %v315_v36, %v314_v35 }
  0x1f   :  { %v332_v37 = vsel %vm326_vm1, %v319_v24, 920167782  ;;  %v336_v38 = vsel %vm326_vm1, %v322_v30, 1326507024  ;;  %v331_v42 = vsel %vm323_vm2, %v310_v34, %v313_v39  ;;  %v327_v50 = vsel %vm323_vm2, %v307_v44, %v310_v34 }
  0x20   :  { %v337_v43 = vsel %vm325_vm4, %v319_v24, %v336_v38  ;;  %v333_v45 = vsel %vm325_vm4, %v316_v40, %v332_v37  ;;  %v335_v46 = vsel %vm323_vm2, %v313_v39, %v316_v40  ;;  %v328_v47 = vsel %vm326_vm1, %v316_v40, 2102212464 }
  0x21   :  { %v334_v48 = vsel %vm324_vm3, %v331_v42, %v333_v45  ;;  %v338_v49 = vsel %vm324_vm3, %v335_v46, %v337_v43  ;;  %v329_v51 = vsel %vm325_vm4, %v313_v39, %v328_v47  ;;  %vm126_vm1 = vcmask 293888  }
  0x22   :  { %65 = vrot.lane.b32.xlu0 %v800_v0, %s754_s29  ;;  %68 = vrot.lane.b32.xlu1 %v800_v0, %s755_s30  ;;  %v866_v52 = vmul.u32.u64.low %v339_v41, %v338_v49  ;;  %v867_v53 = vmul.u32.u64.high %v339_v41, %v338_v49, %v866_v52  ;;  %v330_v54 = vsel %vm324_vm3, %v327_v50, %v329_v51  ;;  %v173_v51 = vld [vmem:[%s969_s1] sm:$0x3]  ;;  %vm128_vm2 = vcmask 326656   ;;  %s776_s1 = smov [#allocation2]  }
  0x23   :  { %v869_v55 = vmul.u32.u64.low %v339_v41, %v334_v48  ;;  %v870_v56 = vmul.u32.u64.high %v339_v41, %v334_v48, %v869_v55  ;;  %v346_v57 = vmul.u32 %v339_v41, %v330_v54  ;;  %vm602_vm3 = vcmp.eq.s32.totalorder %v173_v51, 1  ;;  %s637_s2 = sshll.u32 %s776_s1, 4  ;;  %s638_s2 = int_to_ptr.vmem [resolvable:$true] %s637_s2 }
  0x24   :  { %vm130_vm4 = vcmask 359424   ;;  %s716_s20 = scalar_lea.vmem %s638_s2, 256  ;;  %p721_p1 = scmp.lt.s32.totalorder %s638_s2, %s638_s2 }
  0x25   :  { %vm348_vm5 = vc.u32 %v867_v53, %v869_v55  ;;  %v349_v58 = vadd.s32 1, %v870_v56  ;;  %v347_v10 = vadd.s32 %v869_v55, %v867_v53  ;;  %p717_p0 = scmp.ne.s32.totalorder %s638_s2, %s716_s20  ;;  %p722_p2 = scmp.lt.s32.totalorder %s716_s20, %s716_s20 }
  0x26   :  { %71 = vrot.lane.b32.xlu0 %v800_v0, %s756_s4  ;;  %74 = vrot.lane.b32.xlu1 %v800_v0, %s757_s5 }
  0x27   :  { %v350_v59 = vsel %vm348_vm5, %v349_v58, %v870_v56  ;;  %vm132_vm5 = vcmask 392192   ;;  %p723_p3 = por %p722_p2, %p721_p1 }
  0x28   :  { %v351_v60 = vadd.s32 %v350_v59, %v346_v57 }
  0x29   :  { %p724_p4 = pnand %p723_p3, %p717_p0 }
  0x2a   :  { %77 = vrot.lane.b32.xlu0 %v800_v0, %s758_s6  ;;  %80 = vrot.lane.b32.xlu1 %v800_v0, %s759_s7  ;;  %v352_v61 = vadd.s32 536870912, %v351_v60 }
  0x2c   :  { %v353_v62 = vshrl.u32 %v352_v61, 30 }
  0x2e   :  { %83 = vrot.lane.b32.xlu0 %v800_v0, %s760_s8  ;;  %86 = vrot.lane.b32.xlu1 %v800_v0, %s761_s9  ;;  %v354_v63 = vshll.u32 %v353_v62, 30  ;;  %v377_v44 = vsub.s32 4, %v353_v62 }
  0x30   :  { %v355_v1 = vsub.s32 %v351_v60, %v354_v63  ;;  %v378_v48 = vsel %vm293_vm9, %v377_v44, %v353_v62  ;;  %v775_v63 = vmov 0  }
  0x31   :  { %v380_v50 = vsel %vm879_vm11, 0, %v378_v48 }
  0x32   :  { %89 = vrot.lane.b32.xlu0 %v800_v0, %s762_s12  ;;  %92 = vrot.lane.b32.xlu1 %v800_v0, %s763_s13  ;;  %v357_v5 = vsub.s32 0, %v355_v1  ;;  %v384_v52 = vadd.s32 3, %v380_v50  ;;  %v591_v57 = vand.u32 3, %v380_v50 }
  0x34   :  { %v650_v7 = vmin.u32 %v357_v5, %v355_v1  ;;  %v385_v56 = vand.u32 3, %v384_v52 }
  0x36   :  { %95 = vrot.lane.b32.xlu0 %v800_v0, %s764_s14  ;;  %98 = vrot.lane.b32.xlu1 %v800_v0, %s765_s0  ;;  %v359_v8 = vclz %v650_v7 }
  0x38   :  { %v651_v9 = vadd.s32 4294967294, %v359_v8 }
  0x3a   :  { %101 = vrot.lane.b32.xlu0 %v800_v0, %s766_s15  ;;  %104 = vrot.lane.b32.xlu1 %v800_v0, %s767_s16  ;;  %vm652_vm6 = vcmp.lt.s32.totalorder %v651_v9, 0 }
  0x3b   :  { %v362_v11 = vsel %vm652_vm6, 0, %v651_v9  ;;  %vm134_vm6 = vcmask 424960  }
  0x3c   :  { %v363_v12 = vsub.s32 32, %v362_v11  ;;  %v364_v13 = vshll.u32 %v355_v1, %v362_v11  ;;  %v367_v16 = vsub.s32 4294967266, %v362_v11  ;;  %v897_v1 = vsel %vm602_vm3, 1, %v775_v63 }
  0x3d   :  { %vm138_vm3 = vcmask 490496  }
  0x3e   :  { %107 = vrot.lane.b32.xlu0 %v800_v0, %s768_s17  ;;  %v365_v18 = vshrl.u32 %v347_v10, %v363_v12  ;;  %v368_v19 = vadd.s32 127, %v367_v16  ;;  %v611_v10 = vrot.slane %v897_v1, %v834_v4 }
  0x40   :  { %v366_v20 = vor.u32 %v365_v18, %v364_v13  ;;  %v369_v22 = vshll.u32 %v368_v19, 23 }
  0x42   :  { %v370_v23 = vor.u32 4788187, %v369_v22  ;;  %v373_v24 = vcvt.s32.f32 %v366_v20 }
  0x44   :  { %v371_v26 = vand.u32 2147483647, %v370_v23 }
  0x46   :  { %v374_v30 = vmul.f32 %v373_v24, %v371_v26 }
  0x48   :  { %v375_v33 = vxor.u32 2147483648, %v374_v30 }
  0x4a   :  { %v376_v38 = vsel %vm293_vm9, %v375_v33, %v374_v30  ;;  %vm601_vm9 = vcmp.eq.s32.totalorder %v173_v51, 0 }
  0x4b   :  { %v379_v14 = vsel %vm879_vm11, %v841_v6, %v376_v38  ;;  %vm596_vm11 = vcmp.eq.s32.totalorder %v591_v57, 2  ;;  %v899_v5 = vsel %vm601_vm9, 1, %v775_v63  ;;  %vm148_vm9 = vcmask 654336  }
  0x4c   :  { %708 = vcosq.f32 %v379_v14  ;;  %v624_v12 = vrot.slane %v899_v5, %v834_v4 }
  0x4d   :  { %710 = vsinq.f32 %v379_v14 }
  0x59   :  { %v709_v60 = vpop.eup %708 }
  0x5a   :  { %v711_v7 = vpop.eup %710  ;;  %v391_v9 = vxor.u32 2147483648, %v709_v60 }
  0x5b   :  { %v388_v11 = vxor.u32 2147483648, %v711_v7 }
  0x5c   :  { %v598_v16 = vsel %vm596_vm11, %v391_v9, %v711_v7  ;;  %vm152_vm11 = vcmask 719872  }
  0x74   :  { %v18_v28 = vpop.permute.xlu0 %17  ;;  %v24_v29 = vpop.permute.xlu1 %23 }
  0x75   :  { %v111_v34 = vsel %vm110_vm7, %v800_v0, %v18_v28 }
  0x78   :  { %v21_v35 = vpop.permute.xlu0 %20  ;;  %v27_v36 = vpop.permute.xlu1 %26 }
  0x79   :  { %v113_v37 = vsel %vm112_vm8, %v111_v34, %v21_v35  ;;  %vm387_vm8 = vcmp.eq.s32.totalorder %v385_v56, 0 }
  0x7a   :  { %v115_v39 = vsel %vm114_vm10, %v113_v37, %v24_v29  ;;  %vm390_vm10 = vcmp.eq.s32.totalorder %v385_v56, 2  ;;  %v389_v22 = vsel %vm387_vm8, %v709_v60, %v388_v11  ;;  %vm146_vm8 = vcmask 621568  }
  0x7b   :  { %v117_v40 = vsel %vm116_vm12, %v115_v39, %v27_v36  ;;  %vm593_vm12 = vcmp.eq.s32.totalorder %v591_v57, 0  ;;  %v392_v13 = vsel %vm390_vm10, %v391_v9, %v711_v7  ;;  %vm150_vm10 = vcmask 687104  }
  0x7c   :  { %v30_v41 = vpop.permute.xlu0 %29  ;;  %v33_v42 = vpop.permute.xlu1 %32  ;;  %v595_v23 = vsel %vm593_vm12, %v709_v60, %v388_v11  ;;  %vm154_vm12 = vcmask 752640  }
  0x7d   :  { %v119_v43 = vsel %vm118_vm13, %v117_v40, %v30_v41  ;;  %vm386_vm13 = vcmp.lt.s32.totalorder %v385_v56, 2 }
  0x7e   :  { %v121_v45 = vsel %vm120_vm14, %v119_v43, %v33_v42  ;;  %vm592_vm14 = vcmp.lt.s32.totalorder %v591_v57, 2  ;;  %v393_v26 = vsel %vm386_vm13, %v389_v22, %v392_v13  ;;  %vm158_vm13 = vcmask 818176  }
  0x7f   :  { %v599_v28 = vsel %vm592_vm14, %v595_v23, %v598_v16  ;;  %vm160_vm14 = vcmask 850944  }
  0x80   :  { %v36_v46 = vpop.permute.xlu0 %35  ;;  %v39_v47 = vpop.permute.xlu1 %38 }
  0x81   :  { %v123_v49 = vsel %vm122_vm15, %v121_v45, %v36_v46  ;;  %vm136_vm15 = vcmask 457728  }
  0x82   :  { %v125_v53 = vsel %vm124_vm0, %v123_v49, %v39_v47  ;;  %vm383_vm0 = vweird.f32 %v841_v6 }
  0x83   :  { %v394_v4 = vsel %vm383_vm0, nan, %v393_v26  ;;  %v600_v6 = vsel %vm383_vm0, nan, %v599_v28  ;;  %vm164_vm0 = vcmask 916480  }
  0x84   :  { %v42_v54 = vpop.permute.xlu0 %41  ;;  %v45_v55 = vpop.permute.xlu1 %44 }
  0x85   :  { %v127_v58 = vsel %vm126_vm1, %v125_v53, %v42_v54  ;;  %vm613_vm1 = vcmp.eq.s32.totalorder %v611_v10, 1 }
  0x86   :  { %v129_v59 = vsel %vm128_vm2, %v127_v58, %v45_v55  ;;  %vm626_vm2 = vcmp.eq.s32.totalorder %v624_v12, 1  ;;  %v615_v29 = vsel %vm613_vm1, %v394_v4, %v600_v6  ;;  %vm166_vm1 = vcmask 949248  }
  0x87   :  { %v628_v34 = vsel %vm626_vm2, %v800_v0, %v615_v29  ;;  %v915_v58 = vsub.s32 0, %v824_v2  ;;  %vm168_vm2 = vcmask 982016  }
  0x88   :  { %v48_v61 = vpop.permute.xlu0 %47  ;;  %v51_v62 = vpop.permute.xlu1 %50  ;;  %630 = vst.msk [vmem:[#allocation2 + $0x8] sm:$0xff] %vm110_vm7, %v628_v34  ;;  %vm156_vm7 = vcmask 785408  }
  0x89   :  { %v131_v8 = vsel %vm130_vm4, %v129_v59, %v48_v61  ;;  %vm140_vm4 = vcmask 523264   ;;  %v178_v63 = vrot.slane %v831_v3, %v915_v58 }
  0x8a   :  { %v133_v18 = vsel %vm132_vm5, %v131_v8, %v51_v62  ;;  %vm142_vm5 = vcmask 556032  }
  0x8c   :  { %v54_v19 = vpop.permute.xlu0 %53  ;;  %v57_v20 = vpop.permute.xlu1 %56 }
  0x8d   :  { %v135_v24 = vsel %vm134_vm6, %v133_v18, %v54_v19  ;;  %vm144_vm6 = vcmask 588800  }
  0x8e   :  { %v137_v30 = vsel %vm136_vm15, %v135_v24, %v57_v20  ;;  %vm162_vm15 = vcmask 883712  }
  0x90   :  { %v60_v31 = vpop.permute.xlu0 %59  ;;  %v63_v33 = vpop.permute.xlu1 %62 }
  0x91   :  { %v139_v35 = vsel %vm138_vm3, %v137_v30, %v60_v31  ;;  %vm170_vm3 = vcmask 1014784  }
  0x92   :  { %v141_v36 = vsel %vm140_vm4, %v139_v35, %v63_v33 }
  0x94   :  { %v66_v37 = vpop.permute.xlu0 %65  ;;  %v69_v38 = vpop.permute.xlu1 %68 }
  0x95   :  { %v143_v39 = vsel %vm142_vm5, %v141_v36, %v66_v37 }
  0x96   :  { %v145_v14 = vsel %vm144_vm6, %v143_v39, %v69_v38 }
  0x98   :  { %v72_v40 = vpop.permute.xlu0 %71  ;;  %v75_v41 = vpop.permute.xlu1 %74 }
  0x99   :  { %v147_v42 = vsel %vm146_vm8, %v145_v14, %v72_v40 }
  0x9a   :  { %v149_v43 = vsel %vm148_vm9, %v147_v42, %v75_v41 }
  0x9c   :  { %v78_v44 = vpop.permute.xlu0 %77  ;;  %v81_v0 = vpop.permute.xlu1 %80 }
  0x9d   :  { %v151_v45 = vsel %vm150_vm10, %v149_v43, %v78_v44 }
  0x9e   :  { %v153_v46 = vsel %vm152_vm11, %v151_v45, %v81_v0 }
  0xa0   :  { %v84_v47 = vpop.permute.xlu0 %83  ;;  %v87_v48 = vpop.permute.xlu1 %86 }
  0xa1   :  { %v155_v49 = vsel %vm154_vm12, %v153_v46, %v84_v47 }
  0xa2   :  { %v157_v50 = vsel %vm156_vm7, %v155_v49, %v87_v48 }
  0xa4   :  { %v90_v51 = vpop.permute.xlu0 %89  ;;  %v93_v52 = vpop.permute.xlu1 %92 }
  0xa5   :  { %v159_v53 = vsel %vm158_vm13, %v157_v50, %v90_v51 }
  0xa6   :  { %v161_v54 = vsel %vm160_vm14, %v159_v53, %v93_v52 }
  0xa8   :  { %v96_v55 = vpop.permute.xlu0 %95  ;;  %v99_v56 = vpop.permute.xlu1 %98 }
  0xa9   :  { %v163_v57 = vsel %vm162_vm15, %v161_v54, %v96_v55 }
  0xaa   :  { %v165_v59 = vsel %vm164_vm0, %v163_v57, %v99_v56 }
  0xac   :  { %v102_v60 = vpop.permute.xlu0 %101  ;;  %v105_v62 = vpop.permute.xlu1 %104 }
  0xad   :  { %v167_v61 = vsel %vm166_vm1, %v165_v59, %v102_v60 }
  0xae   :  { %v169_v7 = vsel %vm168_vm2, %v167_v61, %v105_v62 }
  0xb0   :  { %v108_v8 = vpop.permute.xlu0 %107 }
  0xb1   :  { %v919_v9 = vsel %vm170_vm3, %v169_v7, %v108_v8 }
  0xb2   :  { %v922_v10 = vmul.f32 %v178_v63, %v919_v9 }
  0xb4   :  { %v190_v11 = vand.u32 2139095040, %v922_v10  ;;  %v187_v16 = vand.u32 2147483647, %v922_v10  ;;  %vm189_vm12 = vcmp.lt.s32.totalorder %v922_v10, 0 }
  0xb6   :  { %v191_v2 = vshrl.u32 %v190_v11, 23  ;;  %v194_v3 = vand.u32 8388607, %v187_v16  ;;  %vm188_vm7 = vcmp.le.f32.partialorder %v187_v16, 0.7853982 }
  0xb8   :  { %v645_v12 = vadd.s32 4294967169, %v191_v2  ;;  %v195_v34 = vor.u32 8388608, %v194_v3 }
  0xba   :  { %v197_v13 = vadd.s32 1, %v645_v12 }
  0xbc   :  { %vm198_vm4 = vcmp.gt.s32.totalorder %v197_v13, 0 }
  0xbd   :  { %v199_v18 = vsel %vm198_vm4, %v197_v13, 0  ;;  %vm279_vm4 = vweird.f32 %v922_v10 }
  0xbe   :  { %v201_v19 = vand.u32 31, %v199_v18  ;;  %v200_v22 = vshrl.u32 %v199_v18, 5 }
  0xc0   :  { %v202_v20 = vsub.s32 32, %v201_v19  ;;  %v204_v23 = vshll.u32 %v772_v25, %v201_v19  ;;  %v207_v24 = vshll.u32 %v773_v27, %v201_v19  ;;  %v210_v4 = vshll.u32 %v774_v32, %v201_v19 }
  0xc1   :  { %v213_v29 = vshll.u32 %v769_v15, %v201_v19  ;;  %v216_v31 = vshll.u32 %v770_v17, %v201_v19  ;;  %vm219_vm5 = vcmp.lt.s32.totalorder %v200_v22, 1  ;;  %vm222_vm6 = vcmp.lt.s32.totalorder %v200_v22, 4 }
  0xc2   :  { %v205_v26 = vshrl.u32 %v773_v27, %v202_v20  ;;  %v208_v28 = vshrl.u32 %v774_v32, %v202_v20  ;;  %v211_v6 = vshrl.u32 %v769_v15, %v202_v20  ;;  %v214_v30 = vshrl.u32 %v770_v17, %v202_v20 }
  0xc3   :  { %v217_v33 = vshrl.u32 %v771_v21, %v202_v20  ;;  %v203_v40 = vshrl.u32 %v772_v25, %v202_v20  ;;  %vm221_vm8 = vcmp.lt.s32.totalorder %v200_v22, 3  ;;  %vm220_vm9 = vcmp.lt.s32.totalorder %v200_v22, 2 }
  0xc4   :  { %v206_v35 = vor.u32 %v205_v26, %v204_v23  ;;  %v209_v36 = vor.u32 %v208_v28, %v207_v24  ;;  %v212_v37 = vor.u32 %v211_v6, %v210_v4  ;;  %v215_v38 = vor.u32 %v214_v30, %v213_v29 }
  0xc5   :  { %v218_v27 = vor.u32 %v217_v33, %v216_v31  ;;  %v235_v21 = vshll.u32 %v195_v34, 8  ;;  %v607_v34 = vrot.slane %v897_v1, %v915_v58 }
  0xc6   :  { %v224_v39 = vsel %vm222_vm6, %v212_v37, 2102212464  ;;  %v227_v32 = vsel %vm219_vm5, %v206_v35, %v209_v36  ;;  %v231_v14 = vsel %vm219_vm5, %v209_v36, %v212_v37  ;;  %v228_v15 = vsel %vm222_vm6, %v215_v38, 920167782 }
  0xc7   :  { %v232_v41 = vsel %vm222_vm6, %v218_v27, 1326507024  ;;  %v229_v17 = vsel %vm221_vm8, %v212_v37, %v228_v15  ;;  %v223_v43 = vsel %vm219_vm5, %v203_v40, %v206_v35  ;;  %v225_v44 = vsel %vm221_vm8, %v209_v36, %v224_v39 }
  0xc8   :  { %v233_v42 = vsel %vm221_vm8, %v215_v38, %v232_v41  ;;  %v230_v0 = vsel %vm220_vm9, %v227_v32, %v229_v17  ;;  %v226_v50 = vsel %vm220_vm9, %v223_v43, %v225_v44  ;;  %v620_v38 = vrot.slane %v899_v5, %v915_v58 }
  0xc9   :  { %v234_v45 = vsel %vm220_vm9, %v231_v14, %v233_v42  ;;  %v942_v48 = vmul.u32.u64.low %v235_v21, %v230_v0  ;;  %v943_v49 = vmul.u32.u64.high %v235_v21, %v230_v0, %v942_v48  ;;  %v242_v51 = vmul.u32 %v235_v21, %v226_v50 }
  0xca   :  { %v939_v46 = vmul.u32.u64.low %v235_v21, %v234_v45  ;;  %v940_v47 = vmul.u32.u64.high %v235_v21, %v234_v45, %v939_v46  ;;  %vm957_vm15 = vcmp.eq.s32.totalorder %v607_v34, 1  ;;  %vm625_vm5 = vcmp.eq.s32.totalorder %v620_v38, 1 }
  0xcb   :  { %v245_v25 = vadd.s32 1, %v943_v49 }
  0xcc   :  { %vm244_vm10 = vc.u32 %v940_v47, %v942_v48  ;;  %v243_v7 = vadd.s32 %v942_v48, %v940_v47 }
  0xcd   :  { %v246_v52 = vsel %vm244_vm10, %v245_v25, %v943_v49 }
  0xce   :  { %v247_v53 = vadd.s32 %v246_v52, %v242_v51 }
  0xd0   :  { %v248_v54 = vadd.s32 536870912, %v247_v53 }
  0xd2   :  { %v249_v55 = vshrl.u32 %v248_v54, 30 }
  0xd4   :  { %v250_v56 = vshll.u32 %v249_v55, 30  ;;  %v273_v26 = vsub.s32 4, %v249_v55 }
  0xd6   :  { %v251_v57 = vsub.s32 %v247_v53, %v250_v56  ;;  %v274_v6 = vsel %vm189_vm12, %v273_v26, %v249_v55 }
  0xd7   :  { %v276_v29 = vsel %vm188_vm7, 0, %v274_v6 }
  0xd8   :  { %v253_v59 = vsub.s32 0, %v251_v57  ;;  %v280_v30 = vadd.s32 3, %v276_v29  ;;  %v488_v33 = vand.u32 3, %v276_v29 }
  0xda   :  { %v646_v60 = vmin.u32 %v253_v59, %v251_v57  ;;  %v281_v31 = vand.u32 3, %v280_v30  ;;  %vm493_vm14 = vcmp.eq.s32.totalorder %v488_v33, 2  ;;  %vm490_vm1 = vcmp.eq.s32.totalorder %v488_v33, 0 }
  0xdb   :  { %vm489_vm3 = vcmp.lt.s32.totalorder %v488_v33, 2 }
  0xdc   :  { %v255_v61 = vclz %v646_v60  ;;  %vm286_vm13 = vcmp.eq.s32.totalorder %v281_v31, 2  ;;  %vm283_vm0 = vcmp.eq.s32.totalorder %v281_v31, 0  ;;  %vm282_vm2 = vcmp.lt.s32.totalorder %v281_v31, 2 }
  0xde   :  { %v647_v62 = vadd.s32 4294967294, %v255_v61 }
  0xe0   :  { %vm648_vm11 = vcmp.lt.s32.totalorder %v647_v62, 0 }
  0xe1   :  { %v258_v63 = vsel %vm648_vm11, 0, %v647_v62 }
  0xe2   :  { %v259_v8 = vsub.s32 32, %v258_v63  ;;  %v263_v11 = vsub.s32 4294967266, %v258_v63  ;;  %v260_v2 = vshll.u32 %v251_v57, %v258_v63 }
  0xe4   :  { %v261_v12 = vshrl.u32 %v243_v7, %v259_v8  ;;  %v264_v13 = vadd.s32 127, %v263_v11 }
  0xe6   :  { %v262_v18 = vor.u32 %v261_v12, %v260_v2  ;;  %v265_v19 = vshll.u32 %v264_v13, 23 }
  0xe8   :  { %v266_v3 = vor.u32 4788187, %v265_v19  ;;  %v269_v22 = vcvt.s32.f32 %v262_v18 }
  0xea   :  { %v267_v20 = vand.u32 2147483647, %v266_v3 }
  0xec   :  { %v270_v23 = vmul.f32 %v269_v22, %v267_v20 }
  0xee   :  { %v271_v24 = vxor.u32 2147483648, %v270_v23 }
  0xf0   :  { %v272_v28 = vsel %vm189_vm12, %v271_v24, %v270_v23 }
  0xf1   :  { %v275_v4 = vsel %vm188_vm7, %v922_v10, %v272_v28 }
  0xf2   :  { %712 = vcosq.f32 %v275_v4 }
  0xf3   :  { %714 = vsinq.f32 %v275_v4 }
  0xff   :  { %v713_v35 = vpop.eup %712 }
 0x100   :  { %v715_v36 = vpop.eup %714  ;;  %v287_v37 = vxor.u32 2147483648, %v713_v35 }
 0x101   :  { %v284_v16 = vxor.u32 2147483648, %v715_v36 }
 0x102   :  { %v288_v39 = vsel %vm286_vm13, %v287_v37, %v715_v36  ;;  %v495_v32 = vsel %vm493_vm14, %v287_v37, %v715_v36 }
 0x103   :  { %v285_v14 = vsel %vm283_vm0, %v713_v35, %v284_v16  ;;  %v492_v1 = vsel %vm490_vm1, %v713_v35, %v284_v16 }
 0x104   :  { %v289_v5 = vsel %vm282_vm2, %v285_v14, %v288_v39  ;;  %v496_v58 = vsel %vm489_vm3, %v492_v1, %v495_v32 }
 0x105   :  { %v290_v40 = vsel %vm279_vm4, nan, %v289_v5  ;;  %v497_v15 = vsel %vm279_vm4, nan, %v496_v58 }
 0x106   :  { %v614_v41 = vsel %vm957_vm15, %v290_v40, %v497_v15 }
 0x107   :  { %v627_v17 = vsel %vm625_vm5, %v919_v9, %v614_v41 }
 0x108   :  { %629 = vst [vmem:[#allocation2] sm:$0xff] %v627_v17 }
 0x109   :  { %727 = shalt.err (!%p724_p4)
}
 0x10a   :  { %640 = dma.vmem_to_hbm [thread:$0]  %s638_s2, 256, %s971_s3, [#allocation3]  }
 0x10b   :  { %736 = dma.done.wait [#allocation3], 256  }
 0x10c   :  { %737 = vsyncadd [#allocation3], 4294967040 }
 0x10d   :  { %644 = vsyncpa [#allocation3], 1 }

</bundles_post_ra>
